<compile_context>
chip_gen: v6e
topology: v6e:2x2x1
jax: 0.10.0
libtpu: 0.0.40
codegen_flags: <defaults>
</compile_context>

<pallas_src>
import jax
import jax.numpy as jnp
from jax import lax
from jax.experimental import pallas as pl
from jax.experimental.pallas import tpu as pltpu


def _round_up(x, m):
    return -(-x // m) * m


def _vmem_capacity_bytes():
    """Per-core VMEM capacity; fall back to the v7x (smallest) figure."""
    try:
        return int(pltpu.get_tpu_info().vmem_capacity_bytes)
    except Exception:
        return 64 * 1024 * 1024


def _make_kernel(tq, tk, s_true, denom_col, mask_keys):
    def kernel(hm_ref, hk_ref, v_ref, o_ref, acc_ref):
        # hm_ref: (1, tq, 2) f32   [h_q, exact per-row score max]
        # hk_ref: (1, 1, tk) f32   key-side projection
        # v_ref : (1, tk, Hv) bf16 values (+ ones column at denom_col)
        ki = pl.program_id(2)

        @pl.when(ki == 0)
        def _():
            acc_ref[...] = jnp.zeros_like(acc_ref)

        hm = hm_ref[0]                         # (tq, 2)
        hq = hm[:, 0:1]                        # (tq, 1)
        mq = hm[:, 1:2]                        # (tq, 1) exact row max (precomputed)
        hk = hk_ref[0]                         # (1, tk)

        # Rank-1 score tile + exact max subtraction: no running max, no
        # correction rescale, no per-step XLU reduces.  All p values <= 1.
        p = jnp.exp(hq * hk - mq)              # (tq, tk) f32

        if mask_keys:
            kidx = ki * tk + lax.broadcasted_iota(jnp.int32, (tq, tk), 1)
            p = jnp.where(kidx < s_true, p, 0.0)

        # One bf16 MXU matmul (f32 accumulation) produces both the
        # unnormalized P@V and, via the ones column folded into V, the
        # softmax denominator.
        acc_ref[...] += jnp.dot(p.astype(jnp.bfloat16), v_ref[0],
                                preferred_element_type=jnp.float32)

        @pl.when(ki == pl.num_programs(2) - 1)
        def _():
            acc = acc_ref[...]
            denom = acc[:, denom_col:denom_col + 1]        # (tq, 1)
            o_ref[0] = (acc * pl.reciprocal(denom, approx=False)).astype(o_ref.dtype)

    return kernel


def self_attention(x, w, b):
    """x: (B, S, H); w: (1, H); b: (1, 1). Returns (B, S, H) == PyTorch forward."""
    B, S, H = x.shape
    out_dtype = x.dtype
    out_itemsize = jnp.dtype(out_dtype).itemsize

    # --- tiny O(B*S*H) wrapper precompute -----------------------------------
    xf = x.astype(jnp.float32)
    wf = w.astype(jnp.float32)
    bias = b.astype(jnp.float32)[0, 0]

    h = jnp.einsum("bsh,h->bs", xf, wf[0]) + bias            # (B, S)
    gmax = jnp.max(h, axis=-1, keepdims=True)
    gmin = jnp.min(h, axis=-1, keepdims=True)
    m = jnp.maximum(h * gmax, h * gmin)                      # exact row max of scores

    # Values get one extra "ones" column so the MXU accumulates the softmax
    # denominator for free; hidden dim padded to a lane-dense multiple of 128.
    Hv = _round_up(H + 1, 128)
    denom_col = H

    cap = _vmem_capacity_bytes()

    # Query tiling: ~512 rows per tile (VMEM cost ~12*tq*Hv bytes, negligible).
    nq = max(1, -(-S // 512))
    tq = _round_up(-(-S // nq), 8)
    Sq = nq * tq

    # Key/value tiling: single key step (K/V DMA'd once per batch) when the
    # double-buffered bf16 slab fits 3/8 of VMEM (~24 MiB v7x, ~48 MiB v5e/v6e);
    # otherwise a 256-aligned key tile sized against the same budget.
    kv_budget = (cap * 3) // 8
    Sk_full = _round_up(S, 8)
    if 2 * Sk_full * Hv * 2 <= kv_budget:
        tk = Sk_full
    else:
        tk = max(256, ((kv_budget // (4 * Hv)) // 256) * 256)
    Sk = _round_up(S, tk)
    mask_keys = (Sk != S)

    # --- padded operand layouts ----------------------------------------------
    hm = jnp.stack([h, m], axis=-1)                          # (B, S, 2) f32
    if Sq != S:
        hm = jnp.pad(hm, ((0, 0), (0, Sq - S), (0, 0)))

    hk = h[:, None, :]                                       # (B, 1, S) f32
    if Sk != S:
        hk = jnp.pad(hk, ((0, 0), (0, 0), (0, Sk - S)))

    xv = jnp.concatenate([xf, jnp.ones((B, S, 1), jnp.float32)], axis=-1)
    xv = jnp.pad(xv, ((0, 0), (0, Sk - S), (0, Hv - (H + 1))))
    xv = xv.astype(jnp.bfloat16)          # halve dominant HBM traffic (MXU is bf16 anyway)

    grid = (B, Sq // tq, Sk // tk)
    kernel = _make_kernel(tq, tk, S, denom_col, mask_keys)

    # VMEM sizing from actual per-step usage, clamped to 85% of physical.
    vmem_need = (2 * tq * 2 * 4              # hm blocks (double-buffered)
                 + 2 * tk * 4                # hk blocks
                 + 2 * tk * Hv * 2           # bf16 K/V blocks
                 + 2 * tq * Hv * out_itemsize  # output blocks
                 + tq * Hv * 4)              # f32 accumulator scratch
    vmem_limit = int(min(cap * 17 // 20, max(32 * 1024 * 1024, 2 * vmem_need)))

    kv_reads = (Sq // tq) if (Sk // tk) > 1 else 1
    cost = pl.CostEstimate(
        flops=int(2 * B * Sq * Sk * Hv + 4 * B * Sq * Sk),
        transcendentals=int(B * Sq * Sk),
        bytes_accessed=int(xv.size * 2 * kv_reads + hm.size * 4
                           + hk.size * 4 * kv_reads + B * Sq * Hv * out_itemsize),
    )

    out = pl.pallas_call(
        kernel,
        out_shape=jax.ShapeDtypeStruct((B, Sq, Hv), out_dtype),
        grid_spec=pltpu.PrefetchScalarGridSpec(
            num_scalar_prefetch=0,
            grid=grid,
            in_specs=[
                pl.BlockSpec((1, tq, 2), lambda bi, qi, ki: (bi, qi, 0)),   # [h_q, m_q]
                pl.BlockSpec((1, 1, tk), lambda bi, qi, ki: (bi, 0, ki)),   # h_k
                pl.BlockSpec((1, tk, Hv), lambda bi, qi, ki: (bi, ki, 0)),  # V (bf16, +ones col)
            ],
            out_specs=pl.BlockSpec((1, tq, Hv), lambda bi, qi, ki: (bi, qi, 0)),
            scratch_shapes=[pltpu.VMEM((tq, Hv), jnp.float32)],             # unnormalized [P@V | Z]
        ),
        compiler_params=pltpu.CompilerParams(
            dimension_semantics=("parallel", "parallel", "arbitrary"),
            vmem_limit_bytes=vmem_limit,
        ),
        cost_estimate=cost,
    )(hm, hk, xv)

    return out[:, :S, :H]


def self_attention_ref(x, w, b):
    h = jnp.einsum("bsh,oh->bso", x, w) + b[0, 0]        # (B, S, 1)
    scores = jnp.einsum("bso,bto->bst", h, h)            # (B, S, S)
    alpha = jax.nn.softmax(scores, axis=-1)
    return jnp.einsum("bst,bth->bsh", alpha, x)


if __name__ == "__main__":
    B, S, H = 2, 8, 32
    key = jax.random.PRNGKey(0)
    kx, kw, kb = jax.random.split(key, 3)

    x = jax.random.normal(kx, (B, S, H), dtype=jnp.float32)
    # nn.Linear(hidden, 1): weight (1, H), bias (1,) — deterministic init here.
    w = jax.random.normal(kw, (1, H), dtype=jnp.float32) * (1.0 / jnp.sqrt(H))
    b = jax.random.normal(kb, (1, 1), dtype=jnp.float32) * 0.1

    out = jax.block_until_ready(self_attention(x, w, b))
    ref = self_attention_ref(x, w, b)
    assert out.shape == (B, S, H)
    # bf16 P@V / V operands trade a small amount of precision vs the pure-f32
    # reference, hence the relaxed tolerance.
    assert jnp.allclose(out, ref, atol=3e-2, rtol=3e-2), "mismatch vs reference"
    print("KERNEL_OK")
</pallas_src>

<mosaic_0001>
module attributes {stable_mosaic.version = 11 : i64} {
  func.func @kernel(%arg0: i32, %arg1: i32, %arg2: i32, %arg3: memref<1x8x2xf32, #tpu.memory_space<vmem>>, %arg4: memref<1x1x8xf32, #tpu.memory_space<vmem>>, %arg5: memref<1x8x128xbf16, #tpu.memory_space<vmem>>, %arg6: memref<1x8x128xf32, #tpu.memory_space<vmem>>, %arg7: memref<8x128xf32, #tpu.memory_space<vmem>>) attributes {dimension_semantics = [#tpu.dimension_semantics<parallel>, #tpu.dimension_semantics<parallel>, #tpu.dimension_semantics<arbitrary>], iteration_bounds = array<i64: 2, 1, 1>, scalar_prefetch = 0 : i64, scratch_operands = 1 : i64, tpu.core_type = #tpu.core_type<tc>, window_params = [{transform_indices = @transform_0, window_bounds = array<i64: 1, 8, 2>}, {transform_indices = @transform_1, window_bounds = array<i64: 1, 1, 8>}, {transform_indices = @transform_2, window_bounds = array<i64: 1, 8, 128>}, {transform_indices = @transform_3, window_bounds = array<i64: 1, 8, 128>}]} {
    %c0_i32 = arith.constant 0 : i32
    %0 = arith.cmpi eq, %arg2, %c0_i32 : i32
    %1 = arith.extui %0 : i1 to i32
    %c0_i32_0 = arith.constant 0 : i32
    %2 = arith.cmpi ne, %1, %c0_i32_0 : i32
    scf.if %2 {
      %cst_15 = arith.constant 0.000000e+00 : f32
      %25 = vector.broadcast %cst_15 : f32 to vector<8x128xf32>
      %c0_16 = arith.constant 0 : index
      %c0_17 = arith.constant 0 : index
      %26 = vector.load %arg7[%c0_16, %c0_17] : memref<8x128xf32, #tpu.memory_space<vmem>>, vector<8x128xf32>
      tpu.vector_store %arg7[%c0_16, %c0_17], %25 {strides = array<i32>} : memref<8x128xf32, #tpu.memory_space<vmem>>, vector<8x128xf32>,
    } else {
    }
    %c0 = arith.constant 0 : index
    %c0_1 = arith.constant 0 : index
    %c0_2 = arith.constant 0 : index
    %3 = vector.load %arg3[%c0, %c0_1, %c0_2] : memref<1x8x2xf32, #tpu.memory_space<vmem>>, vector<1x8x2xf32>
    %4 = vector.shape_cast %3 : vector<1x8x2xf32> to vector<8x2xf32>
    %5 = vector.extract_strided_slice %4 {offsets = [0, 0], sizes = [8, 1], strides = [1, 1]} : vector<8x2xf32> to vector<8x1xf32>
    %6 = vector.extract_strided_slice %4 {offsets = [0, 1], sizes = [8, 1], strides = [1, 1]} : vector<8x2xf32> to vector<8x1xf32>
    %c0_3 = arith.constant 0 : index
    %c0_4 = arith.constant 0 : index
    %c0_5 = arith.constant 0 : index
    %7 = vector.load %arg4[%c0_3, %c0_4, %c0_5] : memref<1x1x8xf32, #tpu.memory_space<vmem>>, vector<1x1x8xf32>
    %8 = vector.shape_cast %7 : vector<1x1x8xf32> to vector<1x8xf32>
    %9 = vector.broadcast %5 : vector<8x1xf32> to vector<8x8xf32>
    %10 = vector.broadcast %8 : vector<1x8xf32> to vector<8x8xf32>
    %11 = arith.mulf %9, %10 : vector<8x8xf32>
    %12 = vector.broadcast %6 : vector<8x1xf32> to vector<8x8xf32>
    %13 = arith.subf %11, %12 : vector<8x8xf32>
    %14 = math.exp %13 : vector<8x8xf32>
    %c0_6 = arith.constant 0 : index
    %c0_7 = arith.constant 0 : index
    %15 = vector.load %arg7[%c0_6, %c0_7] : memref<8x128xf32, #tpu.memory_space<vmem>>, vector<8x128xf32>
    %16 = arith.truncf %14 : vector<8x8xf32> to vector<8x8xbf16>
    %c0_8 = arith.constant 0 : index
    %c0_9 = arith.constant 0 : index
    %c0_10 = arith.constant 0 : index
    %17 = vector.load %arg5[%c0_8, %c0_9, %c0_10] : memref<1x8x128xbf16, #tpu.memory_space<vmem>>, vector<1x8x128xbf16>
    %18 = vector.shape_cast %17 : vector<1x8x128xbf16> to vector<8x128xbf16>
    %cst = arith.constant dense<0.000000e+00> : vector<8x128xf32>
    %19 = tpu.matmul %16, %18, %cst {dimension_numbers = #tpu.dot_dimension_numbers<[1], [0], [0], [1], [0, 0, 1, 1], [], []>} : vector<8x8xbf16>, vector<8x128xbf16>, vector<8x128xf32> -> vector<8x128xf32>
    %20 = arith.addf %15, %19 : vector<8x128xf32>
    %c0_11 = arith.constant 0 : index
    %c0_12 = arith.constant 0 : index
    %21 = vector.load %arg7[%c0_11, %c0_12] : memref<8x128xf32, #tpu.memory_space<vmem>>, vector<8x128xf32>
    tpu.vector_store %arg7[%c0_11, %c0_12], %20 {strides = array<i32>} : memref<8x128xf32, #tpu.memory_space<vmem>>, vector<8x128xf32>,
    %c0_i32_13 = arith.constant 0 : i32
    %22 = arith.cmpi eq, %arg2, %c0_i32_13 : i32
    %23 = arith.extui %22 : i1 to i32
    %c0_i32_14 = arith.constant 0 : i32
    %24 = arith.cmpi ne, %23, %c0_i32_14 : i32
    scf.if %24 {
      %c0_15 = arith.constant 0 : index
      %c0_16 = arith.constant 0 : index
      %25 = vector.load %arg7[%c0_15, %c0_16] : memref<8x128xf32, #tpu.memory_space<vmem>>, vector<8x128xf32>
      %26 = vector.extract_strided_slice %25 {offsets = [0, 32], sizes = [8, 1], strides = [1, 1]} : vector<8x128xf32> to vector<8x1xf32>
      %27 = tpu.reciprocal %26 : vector<8x1xf32> -> vector<8x1xf32>
      %28 = vector.broadcast %27 : vector<8x1xf32> to vector<8x128xf32>
      %29 = arith.mulf %25, %28 : vector<8x128xf32>
      %c0_17 = arith.constant 0 : index
      %c0_18 = arith.constant 0 : index
      %c0_19 = arith.constant 0 : index
      %30 = vector.load %arg6[%c0_17, %c0_18, %c0_19] : memref<1x8x128xf32, #tpu.memory_space<vmem>>, vector<1x8x128xf32>
      %31 = vector.shape_cast %30 : vector<1x8x128xf32> to vector<8x128xf32>
      %32 = vector.shape_cast %29 : vector<8x128xf32> to vector<1x8x128xf32>
      tpu.vector_store %arg6[%c0_17, %c0_18, %c0_19], %32 {strides = array<i32>} : memref<1x8x128xf32, #tpu.memory_space<vmem>>, vector<1x8x128xf32>,
    } else {
    }
    return
  }
  func.func @transform_0(%arg0: i32, %arg1: i32, %arg2: i32) -> (i32, i32, i32) {
    %c0_i32 = arith.constant 0 : i32
    %c0_i32_0 = arith.constant 0 : i32
    return %arg0, %arg1, %c0_i32 : i32, i32, i32
  }
  func.func @transform_1(%arg0: i32, %arg1: i32, %arg2: i32) -> (i32, i32, i32) {
    %c0_i32 = arith.constant 0 : i32
    %c0_i32_0 = arith.constant 0 : i32
    return %arg0, %c0_i32, %arg2 : i32, i32, i32
  }
  func.func @transform_2(%arg0: i32, %arg1: i32, %arg2: i32) -> (i32, i32, i32) {
    %c0_i32 = arith.constant 0 : i32
    %c0_i32_0 = arith.constant 0 : i32
    return %arg0, %arg2, %c0_i32 : i32, i32, i32
  }
  func.func @transform_3(%arg0: i32, %arg1: i32, %arg2: i32) -> (i32, i32, i32) {
    %c0_i32 = arith.constant 0 : i32
    %c0_i32_0 = arith.constant 0 : i32
    return %arg0, %arg1, %c0_i32 : i32, i32, i32
  }
}

</mosaic_0001>

<bundles_post_ra>
// kernel: tpu_custom_call.1
= control target key start
LH: loop header
LB: loop body
LE: loop exit
PB: predicated region body
PF: predicated region fallthrough
CT: control target
= control target key end

     0   :  { %8 = vsyncpa [#allocation4], 0  ;;  %s758_s0 = inlined_call_operand.vmem [shape: f32[2,8,2], index: 0, kind: input, shape index: {}]   ;;  %s759_s1 = inlined_call_operand.vmem [shape: f32[2,1,8], index: 1, kind: input, shape index: {}]   ;;  %s760_s2 = inlined_call_operand.vmem [shape: bf16[2,8,128], index: 2, kind: input, shape index: {}]   ;;  %s761_s3 = inlined_call_operand.hbm [shape: f32[2,8,128], index: 3, kind: output, shape index: {}]  }
   0x1   :  { %10 = vsyncpa [#allocation4 + $0x1], 0  ;;  %s653_s12 = smov 0   ;;  %s655_s13 = smov 0  }
   0x2   :  { %s657_s14 = smov 0   ;;  %s659_s15 = smov 0  }
   0x3   :  { %s661_s16 = smov 0   ;;  %s663_s17 = smov 0  }
   0x4 LB: > { %s459_s18 = sadd.s32 4294967295, %s625_s17   ;;  %s460_s19 = sadd.s32 4294967294, %s625_s17   ;;  %s625_s17 = sphi %s663_s17, %s16_s17   ;;  %s621_s16 = sphi %s661_s16, %s768_s16   ;;  %s617_s15 = sphi %s659_s15, %s767_s15   ;;  %s613_s14 = sphi %s657_s14, %s766_s14   ;;  %s609_s13 = sphi %s655_s13, %s765_s13   ;;  %s605_s12 = sphi %s653_s12, %s764_s12  }
   0x5   : > { %s35_s20 = sadd.s32 1, %s621_s16  ;;  %s128_s21 = sadd.s32 1, %s613_s14 }
   0x6   : > { %p37_p0 = scmp.ge.s32.totalorder %s35_s20, 2  ;;  %p138_p1 = scmp.ne.s32.totalorder %s613_s14, %s609_s13 }
   0x7   : > { %p139_p2 = scmp.eq.s32.totalorder %s459_s18, 1  ;;  %p144_p3 = scmp.ne.s32.totalorder %s609_s13, %s605_s12 }
   0x8   : > { %s770_s20 = smov (%p37_p0, %s35_s20), 0  ;;  %p145_p5 = scmp.eq.s32.totalorder %s460_s19, 1 }
   0x9   : > { %p693_p4 = por %p139_p2, %p138_p1  ;;  %s123_s23 = ssub.s32 %s621_s16, %s770_s20 }
   0xa   : > { %p463_p6 = scmp.ge.s32.totalorder %s625_s17, 1  ;;  %p126_p7 = scmp.eq.s32.totalorder %s123_s23, 0 }
   0xb   : > { %p700_p8 = por %p145_p5, %p144_p3  ;;  %p192_p9 = scmp.lt.s32.totalorder %s625_s17, 3 }
   0xc   : > { %s706_s25 = scalar_select %p126_p7, %s613_s14, %s128_s21  }
   0xd   : > { %p193_p10 = pnand %p463_p6, %p192_p9 }
   0xe   : > { %p231_p11 = scmp.lt.s32.totalorder (!%p193_p10), %s617_s15, 1  ;;  %s228_s11 = sand.u32 (!%p193_p10), 1, %s609_s13  }
   0xf   : > { %196 = sbr.rel (%p193_p10) target bundleno = 520 (0x208), region = 32  ;;  %s464_s18 = sshll.u32 (!%p193_p10), %s228_s11, 3 }
  0x10   : > { %s470_s19 = sshll.u32 (!%p193_p10), %s617_s15, 7  ;;  %s230_s21 = scalar_lea.vmem (!%p193_p10), [#allocation3], %s464_s18 }
  0x11   : > { %s358_s23 = sshll.u32 (!%p193_p10), %s230_s21, 4  ;;  %s356_s28 = scalar_lea.hbm (!%p193_p10), %s761_s3, %s470_s19  ;;  %s359_s23 = int_to_ptr.vmem [resolvable:$true] %s358_s23 }
  0x12   : > { %s344_s29 = scalar_lea.sflag (!%p193_p10), [#allocation4], %s228_s11 }
  0x14   : > { %v627_v0 = vmov 0   ;;  %s232_s26 = scalar_select %p231_p11, %s617_s15, 1  ;;  %v628_v2 = vmov 1   ;;  %vm285_vm0 = vcmask 1043456   ;;  %v629_v4 = vmov 0.0  }
  0x15   : > { %541 = vset.pattern.permute.xlu0 %v627_v0  ;;  %475 = vmatprep.subr.bf16.mxu0 %v629_v4  ;;  %vm630_vm1 = vmmov 0   ;;  %vm281_vm2 = vcmask 64512   ;;  %v631_v14 = vmov 32  }
  0x16   : > { %s465_s27 = sshll.u32 %s232_s26, 3  ;;  %s466_s4 = sshll.u32 %s232_s26, 2  ;;  %477 = vmatprep.mubr.msk.bf16.mxu0 %vm630_vm1, %v629_v4  ;;  %543 = vset.pattern.permute.xlu1 %v631_v14 }
  0x17   : > { %s237_s30 = scalar_lea.vmem %s758_s0, %s465_s27  ;;  %s250_s7 = scalar_lea.vmem %s760_s2, %s466_s4 }
  0x18   : > { %v257_v1 = vld [vmem:[%s237_s30] sm:$0xff]  ;;  %s243_s10 = scalar_lea.vmem %s759_s1, %s232_s26  ;;  %s549_s30 = scalar_lea.vmem %s359_s23, 128 }
  0x19   : > { %261 = vperm.xlu0 %541, %v257_v1   ;;  %v280_v3 = vld [vmem:[%s250_s7] sm:$0xf]  ;;  %p550_p12 = scmp.ne.s32.totalorder %s359_s23, %s549_s30  ;;  %s632_s4 = smov [#allocation3]  }
  0x1a   : > { %v287_v5 = vsel %vm285_vm0, %v280_v3, 0  ;;  %v467_v7 = vld [vmem:[%s243_s10] ss:$0 sm:$0xff]  ;;  %s553_s5 = sshll.u32 %s632_s4, 4  ;;  %s554_s5 = int_to_ptr.vmem [resolvable:$false] %s553_s5 }
  0x1b   : > { %476 = vmatpush3.bf16.msra.mxu0 %v287_v5  ;;  %p551_p13 = pnand %p550_p12, %p693_p4  ;;  %s555_s15 = scalar_lea.vmem %s554_s5, 256 }
  0x1c   : > { %p556_p1 = scmp.lt.s32.totalorder %s359_s23, %s554_s5  ;;  %p557_p2 = scmp.lt.s32.totalorder %s555_s15, %s549_s30 }
  0x1d   : > { %542 = vset.pattern.permute.xlu0 %v628_v2  ;;  %p552_p0 = pneg %p551_p13 }
  0x1e   : > { %272 = vperm.xlu0 %542, %v257_v1   ;;  %p558_p3 = por %p557_p2, %p556_p1 }
  0x20   : > { %p559_p5 = pnand %p558_p3, %p552_p0 }
  0x22   : > { %544 = vset.pattern.permute.xlu0 %v631_v14 }
  0x94   : > { %v262_v6 = vpop.permute.xlu0 %261 }
  0x95   : > { %v270_v8 = vmul.f32 %v467_v7, %v262_v6 }
  0x99   : > { %v273_v9 = vpop.permute.xlu0 %272 }
  0x9a   : > { %v275_v10 = vsub.f32 %v270_v8, %v273_v9 }
  0x9c   : > { %v276_v11 = vmul.f32 1.442695, %v275_v10 }
  0x9e   : > { %545 = vpow2.f32 %v276_v11 }
  0xab   : > { %v546_v12 = vpop.eup %545 }
  0xac   : > { %v279_v13 = vpack.c.bf16 %v546_v12, %v546_v12 }
  0xae   : > { %478 = vmatmul.mubr.msk.bf16.vlgmr.msra.gmra.mxu0 %vm281_vm2, %v279_v13 }
 0x16e   : > { %v323_v15 = vpop.f32.mrf.mxu0 }
 0x16f   : > { %547 = vrcp.f32 %v323_v15 }
 0x170   : > { %v479_v16 = vpop.f32.mrf.mxu0 }
 0x172   : > { %v326_v17 = vpop.f32.mrf.mxu0 }
 0x174   : > { %v480_v18 = vpop.f32.mrf.mxu0 }
 0x17c   : > { %v548_v19 = vpop.eup %547 }
 0x17d   : > { %338 = vperm.xlu1 %543, %v548_v19  }
 0x1f8   : > { %v339_v20 = vpop.permute.xlu1 %338 }
 0x1f9   : > { %v341_v21 = vmul.f32 %v339_v20, %v323_v15 }
 0x1fb   : > { %342 = vst [vmem:[%s230_s21] sm:$0xff] %v341_v21 }
 0x1fc   : > { %562 = shalt.err (!%p559_p5)
}
 0x1fd   : > { %s563_s6 = scalar_lea.hbm %s356_s28, 128  ;;  %s567_s9 = scalar_lea.hbm %s761_s3, 256 }
 0x1fe   : > { %p564_p6 = scmp.ne.s32.totalorder %s356_s28, %s563_s6  ;;  %p568_p10 = scmp.lt.s32.totalorder %s356_s28, %s761_s3 }
 0x1ff   : > { %p569_p11 = scmp.lt.s32.totalorder %s567_s9, %s563_s6 }
 0x200   : > { %p565_p7 = pnand %p564_p6, %p693_p4 }
 0x201   : > { %p570_p12 = por %p569_p11, %p568_p10 }
 0x202   : > { %p566_p9 = pneg %p565_p7 }
 0x204   : > { %p571_p13 = pnand %p570_p12, %p566_p9 }
 0x206   : > { %574 = shalt.err (!%p571_p13)
}
 0x207   : > { %481 = dma.vmem_to_hbm [thread:$0]  (%p693_p4), %s359_s23, 128, %s356_s28, %s344_s29  }
 0x208 PF: > { %p487_p0 = scmp.ge.s32.totalorder %s625_s17, 2  ;;  %s370_s18 = sand.u32 1, %s605_s12  }
 0x209   : > { %s371_s19 = scalar_lea.sflag [#allocation4], %s370_s18 }
 0x20a   : > { %p484_p1 = pnand %p487_p0, %p700_p8 }
 0x20c   : > { %p485_p2 = pneg %p484_p1 }
 0x20e   : > { %600 = dma.done.wait (%p485_p2), %s371_s19, 128  }
 0x20f   : > { %602 = vsyncadd (%p485_p2), %s371_s19, 4294967168  ;;  %s16_s17 = sadd.s32 1, %s625_s17   ;;  %s764_s12 = smov %s609_s13 }
 0x210   : > { %p13_p3 = scmp.ge.s32.totalorder %s16_s17, 4   ;;  %s765_s13 = smov %s613_s14 }
 0x211   : > { %s766_s14 = smov %s706_s25  ;;  %s767_s15 = smov %s621_s16 }
 0x212   : > { %s768_s16 = smov %s770_s20  ;;  %15 = sbr.rel (!%p13_p3) target bundleno = 4 (0x4), region = 81 }
 0x217   :  { %376 = vsyncpa [#allocation4], 1 }
 0x218   :  { %378 = vsyncpa [#allocation4 + $0x1], 1 }

</bundles_post_ra>
